<compile_context>
chip_gen: v6e
topology: v6e:2x2x1
jax: 0.10.0
libtpu: 0.0.40
codegen_flags: <defaults>
</compile_context>

<pallas_src>
import functools

import jax
import jax.numpy as jnp
from jax.experimental import pallas as pl
from jax.experimental.pallas import tpu as pltpu

H1 = 512
H2 = 256
LANE = 128
SUBLANE = 8


def _round_up(x: int, m: int) -> int:
    return ((x + m - 1) // m) * m


def _choose_tb(batch: int):
    """Pick (TB, B_pad): biggest tile with small padding waste, preferring >=2
    grid steps (v7x megacore) when the tile can stay >= 256 rows."""
    b_su = _round_up(max(batch, SUBLANE), SUBLANE)
    max_waste = max(b_su // 8, SUBLANE)
    acceptable = []
    for tb in (1024, 512, 256, 128, 64, 32, 16, 8):
        tb_eff = min(tb, b_su)
        b_pad = _round_up(b_su, tb_eff)
        cand = (tb_eff, b_pad)
        if b_pad - b_su <= max_waste and cand not in acceptable:
            acceptable.append(cand)
    # Prefer a choice that leaves >= 2 grid steps while keeping a big tile.
    for tb_eff, b_pad in acceptable:
        if b_pad // tb_eff >= 2 and tb_eff >= 256:
            return tb_eff, b_pad
    return acceptable[0]


def _vmem_limit(needed_bytes: int) -> int:
    """Generation-aware VMEM limit: headroom below physical capacity."""
    cap = 64 << 20  # conservative default (v7x per-TC VMEM)
    try:
        info = pltpu.get_tpu_info()
        cap = int(getattr(info, "vmem_capacity_bytes", cap))
    except Exception:
        pass
    lo = 16 << 20
    hi = max(lo, (cap * 3) // 4)
    return int(min(max((needed_bytes * 3) // 2, lo), hi))


def _resident_spec(shape, single_buffer: bool) -> pl.BlockSpec:
    """Constant-index_map (VMEM-resident) BlockSpec; optionally single-buffered."""
    index_map = lambda i: (0,) * len(shape)
    if single_buffer and hasattr(pl, "Buffered"):
        try:
            return pl.BlockSpec(shape, index_map, pipeline_mode=pl.Buffered(1))
        except TypeError:
            pass  # older BlockSpec signature without pipeline_mode
    return pl.BlockSpec(shape, index_map)


def _mlp_kernel(x_ref, w1_ref, b1_ref, w2_ref, b2_ref, w3_ref, b3_ref, o_ref):
    """One batch tile of the fused 3-layer MLP.

    x_ref:  [TB, K_pad]  bf16
    w*_ref: bf16 weights ([K_pad,512], [512,256], [256,C_pad])
    b*_ref: f32 biases   ([1,512], [1,256], [1,C_pad])
    o_ref:  [TB, C_pad]  bf16 logits (padded classes are exactly 0)
    """
    # Layer 1: bf16 MXU matmul, f32 accumulate; bias + ReLU in f32.
    h1 = jnp.dot(x_ref[...], w1_ref[...], preferred_element_type=jnp.float32)
    h1 = jnp.maximum(h1 + b1_ref[...], 0.0).astype(jnp.bfloat16)
    # Layer 2
    h2 = jnp.dot(h1, w2_ref[...], preferred_element_type=jnp.float32)
    h2 = jnp.maximum(h2 + b2_ref[...], 0.0).astype(jnp.bfloat16)
    # Layer 3 (logits, no activation); store bf16 (lane-dense, unmasked vst)
    logits = jnp.dot(h2, w3_ref[...], preferred_element_type=jnp.float32)
    o_ref[...] = (logits + b3_ref[...]).astype(o_ref.dtype)


def pack_params(params):
    """Pad + cast parameters ONCE (bf16 weights, f32 (1,N) biases).

    Returns (packed_params, num_classes)."""
    w1, b1, w2, b2, w3, b3 = params
    K = w1.shape[0]
    C = w3.shape[1]
    K_pad = _round_up(max(K, LANE), LANE)
    C_pad = _round_up(max(C, LANE), LANE)
    bf16, f32 = jnp.bfloat16, jnp.float32

    w1p = jnp.zeros((K_pad, H1), bf16).at[:K, :].set(w1.astype(bf16))
    w2p = w2.astype(bf16)
    w3p = jnp.zeros((H2, C_pad), bf16).at[:, :C].set(w3.astype(bf16))
    b1p = jnp.reshape(b1, (1, H1)).astype(f32)
    b2p = jnp.reshape(b2, (1, H2)).astype(f32)
    b3p = jnp.zeros((1, C_pad), f32).at[:, :C].set(jnp.reshape(b3, (1, C)).astype(f32))
    return (w1p, b1p, w2p, b2p, w3p, b3p), C


@functools.partial(jax.jit, static_argnames=("num_classes",))
def clause_classifier_forward(x, packed, *, num_classes):
    """Fused 3-layer MLP forward. x: [B, input_size] -> f32 logits [B, num_classes]."""
    w1p, b1p, w2p, b2p, w3p, b3p = packed
    B, K = x.shape
    K_pad = w1p.shape[0]
    C_pad = w3p.shape[1]

    # ---- batch tile selection + lane-dense input padding (exact) ----
    TB, B_pad = _choose_tb(B)
    xb = jnp.zeros((B_pad, K_pad), jnp.bfloat16).at[:B, :K].set(x.astype(jnp.bfloat16))

    weight_bytes = ((w1p.size + w2p.size + w3p.size) * 2
                    + (b1p.size + b2p.size + b3p.size) * 4)
    # Only bother single-buffering resident weights when doubling them would
    # actually eat meaningful VMEM.
    single_buffer_weights = weight_bytes > (4 << 20)

    # ---- BlockSpecs: x/out batch-tiled, weights/biases VMEM-resident ----
    x_spec = pl.BlockSpec((TB, K_pad), lambda i: (i, 0))
    o_spec = pl.BlockSpec((TB, C_pad), lambda i: (i, 0))
    w_specs = [_resident_spec(a.shape, single_buffer_weights)
               for a in (w1p, b1p, w2p, b2p, w3p, b3p)]

    # ---- compiler hints ----
    flops = 2 * B_pad * (K_pad * H1 + H1 * H2 + H2 * C_pad)
    bytes_accessed = (xb.size * 2            # x read (bf16)
                      + B_pad * C_pad * 2    # logits written (bf16)
                      + weight_bytes)        # weights + biases
    w_bufs = 1 if single_buffer_weights else 2
    vmem_needed = (w_bufs * weight_bytes
                   + 2 * (TB * K_pad * 2 + TB * C_pad * 2)   # dbl-buffered x/out tiles
                   + TB * (H1 + H2) * 6)                     # f32 + bf16 intermediates
    vmem_limit = _vmem_limit(vmem_needed)

    out = pl.pallas_call(
        _mlp_kernel,
        out_shape=jax.ShapeDtypeStruct((B_pad, C_pad), jnp.bfloat16),
        grid=(B_pad // TB,),
        in_specs=[x_spec] + w_specs,
        out_specs=o_spec,
        compiler_params=pltpu.CompilerParams(
            dimension_semantics=("parallel",),
            vmem_limit_bytes=vmem_limit,
        ),
        cost_estimate=pl.CostEstimate(
            flops=flops, transcendentals=0, bytes_accessed=bytes_accessed),
    )(xb, w1p, b1p, w2p, b2p, w3p, b3p)

    return out[:B, :num_classes].astype(jnp.float32)


def init_params(key, input_size, num_classes):
    """Deterministic synthetic parameters (PyTorch-style uniform fan-in init)."""
    dims = [(input_size, H1), (H1, H2), (H2, num_classes)]
    params = []
    for i, (fan_in, fan_out) in enumerate(dims):
        kw, kb = jax.random.split(jax.random.fold_in(key, i))
        bound = 1.0 / jnp.sqrt(fan_in)
        w = jax.random.uniform(kw, (fan_in, fan_out), jnp.float32, -bound, bound)
        b = jax.random.uniform(kb, (1, fan_out), jnp.float32, -bound, bound)
        params += [w, b]
    return tuple(params)


def reference_forward(x, params):
    """Pure-JAX reference with the same bf16-matmul / f32-accumulate / bf16-out numerics."""
    w1, b1, w2, b2, w3, b3 = params
    bf16, f32 = jnp.bfloat16, jnp.float32
    h1 = jnp.dot(x.astype(bf16), w1.astype(bf16), preferred_element_type=f32)
    h1 = jnp.maximum(h1 + b1.reshape(1, -1), 0.0).astype(bf16)
    h2 = jnp.dot(h1, w2.astype(bf16), preferred_element_type=f32)
    h2 = jnp.maximum(h2 + b2.reshape(1, -1), 0.0).astype(bf16)
    logits = jnp.dot(h2, w3.astype(bf16), preferred_element_type=f32) + b3.reshape(1, -1)
    return logits.astype(bf16).astype(f32)


if __name__ == "__main__":
    input_size = 32
    num_classes = 16
    batch = 8

    key = jax.random.PRNGKey(0)
    kx, kp = jax.random.split(key)
    x = jax.random.normal(kx, (batch, input_size), dtype=jnp.float32)
    params = init_params(kp, input_size, num_classes)

    packed, n_cls = pack_params(params)

    logits = clause_classifier_forward(x, packed, num_classes=n_cls)
    jax.block_until_ready(logits)

    ref = reference_forward(x, params)
    assert logits.shape == (batch, num_classes), logits.shape
    assert jnp.allclose(logits, ref, atol=2e-2, rtol=2e-2), "mismatch vs reference"

    print("KERNEL_OK")
</pallas_src>

<mosaic_0001>
module attributes {stable_mosaic.version = 11 : i64} {
  func.func @_mlp_kernel(%arg0: i32, %arg1: memref<8x128xbf16, #tpu.memory_space<vmem>>, %arg2: memref<128x512xbf16, #tpu.memory_space<vmem>>, %arg3: memref<1x512xf32, #tpu.memory_space<vmem>>, %arg4: memref<512x256xbf16, #tpu.memory_space<vmem>>, %arg5: memref<1x256xf32, #tpu.memory_space<vmem>>, %arg6: memref<256x128xbf16, #tpu.memory_space<vmem>>, %arg7: memref<1x128xf32, #tpu.memory_space<vmem>>, %arg8: memref<8x128xbf16, #tpu.memory_space<vmem>>) attributes {dimension_semantics = [#tpu.dimension_semantics<parallel>], iteration_bounds = array<i64: 1>, scalar_prefetch = 0 : i64, scratch_operands = 0 : i64, tpu.core_type = #tpu.core_type<tc>, window_params = [{transform_indices = @transform_0, window_bounds = array<i64: 8, 128>}, {pipeline_mode = #tpu.pipeline_mode<synchronous>, transform_indices = @transform_1, window_bounds = array<i64: 128, 512>}, {pipeline_mode = #tpu.pipeline_mode<synchronous>, transform_indices = @transform_2, window_bounds = array<i64: 1, 512>}, {pipeline_mode = #tpu.pipeline_mode<synchronous>, transform_indices = @transform_3, window_bounds = array<i64: 512, 256>}, {pipeline_mode = #tpu.pipeline_mode<synchronous>, transform_indices = @transform_4, window_bounds = array<i64: 1, 256>}, {pipeline_mode = #tpu.pipeline_mode<synchronous>, transform_indices = @transform_5, window_bounds = array<i64: 256, 128>}, {pipeline_mode = #tpu.pipeline_mode<synchronous>, transform_indices = @transform_6, window_bounds = array<i64: 1, 128>}, {transform_indices = @transform_7, window_bounds = array<i64: 8, 128>}]} {
    %c0 = arith.constant 0 : index
    %c0_0 = arith.constant 0 : index
    %0 = vector.load %arg1[%c0, %c0_0] : memref<8x128xbf16, #tpu.memory_space<vmem>>, vector<8x128xbf16>
    %c0_1 = arith.constant 0 : index
    %c0_2 = arith.constant 0 : index
    %1 = vector.load %arg2[%c0_1, %c0_2] : memref<128x512xbf16, #tpu.memory_space<vmem>>, vector<128x512xbf16>
    %cst = arith.constant dense<0.000000e+00> : vector<8x512xf32>
    %2 = tpu.matmul %0, %1, %cst {dimension_numbers = #tpu.dot_dimension_numbers<[1], [0], [0], [1], [0, 0, 1, 1], [], []>} : vector<8x128xbf16>, vector<128x512xbf16>, vector<8x512xf32> -> vector<8x512xf32>
    %c0_3 = arith.constant 0 : index
    %c0_4 = arith.constant 0 : index
    %3 = vector.load %arg3[%c0_3, %c0_4] : memref<1x512xf32, #tpu.memory_space<vmem>>, vector<1x512xf32>
    %4 = vector.broadcast %3 : vector<1x512xf32> to vector<8x512xf32>
    %5 = arith.addf %2, %4 : vector<8x512xf32>
    %cst_5 = arith.constant 0.000000e+00 : f32
    %6 = vector.broadcast %cst_5 : f32 to vector<8x512xf32>
    %7 = arith.maximumf %5, %6 : vector<8x512xf32>
    %8 = arith.truncf %7 : vector<8x512xf32> to vector<8x512xbf16>
    %c0_6 = arith.constant 0 : index
    %c0_7 = arith.constant 0 : index
    %9 = vector.load %arg4[%c0_6, %c0_7] : memref<512x256xbf16, #tpu.memory_space<vmem>>, vector<512x256xbf16>
    %cst_8 = arith.constant dense<0.000000e+00> : vector<8x256xf32>
    %10 = tpu.matmul %8, %9, %cst_8 {dimension_numbers = #tpu.dot_dimension_numbers<[1], [0], [0], [1], [0, 0, 1, 1], [], []>} : vector<8x512xbf16>, vector<512x256xbf16>, vector<8x256xf32> -> vector<8x256xf32>
    %c0_9 = arith.constant 0 : index
    %c0_10 = arith.constant 0 : index
    %11 = vector.load %arg5[%c0_9, %c0_10] : memref<1x256xf32, #tpu.memory_space<vmem>>, vector<1x256xf32>
    %12 = vector.broadcast %11 : vector<1x256xf32> to vector<8x256xf32>
    %13 = arith.addf %10, %12 : vector<8x256xf32>
    %cst_11 = arith.constant 0.000000e+00 : f32
    %14 = vector.broadcast %cst_11 : f32 to vector<8x256xf32>
    %15 = arith.maximumf %13, %14 : vector<8x256xf32>
    %16 = arith.truncf %15 : vector<8x256xf32> to vector<8x256xbf16>
    %c0_12 = arith.constant 0 : index
    %c0_13 = arith.constant 0 : index
    %17 = vector.load %arg6[%c0_12, %c0_13] : memref<256x128xbf16, #tpu.memory_space<vmem>>, vector<256x128xbf16>
    %cst_14 = arith.constant dense<0.000000e+00> : vector<8x128xf32>
    %18 = tpu.matmul %16, %17, %cst_14 {dimension_numbers = #tpu.dot_dimension_numbers<[1], [0], [0], [1], [0, 0, 1, 1], [], []>} : vector<8x256xbf16>, vector<256x128xbf16>, vector<8x128xf32> -> vector<8x128xf32>
    %c0_15 = arith.constant 0 : index
    %c0_16 = arith.constant 0 : index
    %19 = vector.load %arg7[%c0_15, %c0_16] : memref<1x128xf32, #tpu.memory_space<vmem>>, vector<1x128xf32>
    %20 = vector.broadcast %19 : vector<1x128xf32> to vector<8x128xf32>
    %21 = arith.addf %18, %20 : vector<8x128xf32>
    %22 = arith.truncf %21 : vector<8x128xf32> to vector<8x128xbf16>
    %c0_17 = arith.constant 0 : index
    %c0_18 = arith.constant 0 : index
    %23 = vector.load %arg8[%c0_17, %c0_18] : memref<8x128xbf16, #tpu.memory_space<vmem>>, vector<8x128xbf16>
    tpu.vector_store %arg8[%c0_17, %c0_18], %22 {strides = array<i32>} : memref<8x128xbf16, #tpu.memory_space<vmem>>, vector<8x128xbf16>,
    return
  }
  func.func @transform_0(%arg0: i32) -> (i32, i32) {
    %c0_i32 = arith.constant 0 : i32
    %c0_i32_0 = arith.constant 0 : i32
    return %arg0, %c0_i32 : i32, i32
  }
  func.func @transform_1(%arg0: i32) -> (i32, i32) {
    %c0_i32 = arith.constant 0 : i32
    %c0_i32_0 = arith.constant 0 : i32
    %c0_i32_1 = arith.constant 0 : i32
    return %c0_i32, %c0_i32_0 : i32, i32
  }
  func.func @transform_2(%arg0: i32) -> (i32, i32) {
    %c0_i32 = arith.constant 0 : i32
    %c0_i32_0 = arith.constant 0 : i32
    %c0_i32_1 = arith.constant 0 : i32
    return %c0_i32, %c0_i32_0 : i32, i32
  }
  func.func @transform_3(%arg0: i32) -> (i32, i32) {
    %c0_i32 = arith.constant 0 : i32
    %c0_i32_0 = arith.constant 0 : i32
    %c0_i32_1 = arith.constant 0 : i32
    return %c0_i32, %c0_i32_0 : i32, i32
  }
  func.func @transform_4(%arg0: i32) -> (i32, i32) {
    %c0_i32 = arith.constant 0 : i32
    %c0_i32_0 = arith.constant 0 : i32
    %c0_i32_1 = arith.constant 0 : i32
    return %c0_i32, %c0_i32_0 : i32, i32
  }
  func.func @transform_5(%arg0: i32) -> (i32, i32) {
    %c0_i32 = arith.constant 0 : i32
    %c0_i32_0 = arith.constant 0 : i32
    %c0_i32_1 = arith.constant 0 : i32
    return %c0_i32, %c0_i32_0 : i32, i32
  }
  func.func @transform_6(%arg0: i32) -> (i32, i32) {
    %c0_i32 = arith.constant 0 : i32
    %c0_i32_0 = arith.constant 0 : i32
    %c0_i32_1 = arith.constant 0 : i32
    return %c0_i32, %c0_i32_0 : i32, i32
  }
  func.func @transform_7(%arg0: i32) -> (i32, i32) {
    %c0_i32 = arith.constant 0 : i32
    %c0_i32_0 = arith.constant 0 : i32
    return %arg0, %c0_i32 : i32, i32
  }
}

</mosaic_0001>

<bundles_post_ra>
// kernel: clause_classifier_forward.1
= control target key start
LH: loop header
LB: loop body
LE: loop exit
PB: predicated region body
PF: predicated region fallthrough
CT: control target
= control target key end

     0   :  { %12 = vsyncpa [#allocation3], 0  ;;  %s1491_s0 = inlined_call_operand.vmem [shape: bf16[8,128], index: 0, kind: input, shape index: {}]   ;;  %s1492_s1 = inlined_call_operand.hbm [shape: bf16[128,512], index: 1, kind: input, shape index: {}]   ;;  %s1493_s2 = inlined_call_operand.vmem [shape: f32[1,512], index: 2, kind: input, shape index: {}]   ;;  %s1494_s3 = inlined_call_operand.hbm [shape: bf16[512,256], index: 3, kind: input, shape index: {}]   ;;  %s1495_s4 = inlined_call_operand.vmem [shape: f32[1,256], index: 4, kind: input, shape index: {}]   ;;  %s1496_s5 = inlined_call_operand.hbm [shape: bf16[256,128], index: 5, kind: input, shape index: {}]   ;;  %s1497_s6 = inlined_call_operand.vmem [shape: f32[1,128], index: 6, kind: input, shape index: {}]   ;;  %s1498_s7 = inlined_call_operand.vmem [shape: bf16[8,128], index: 7, kind: output, shape index: {}]  }
   0x1   :  { %13 = vsyncpa [#allocation5], 0  ;;  %s1407_s24 = smov [#allocation4]  }
   0x2   :  { %s35_s25 = sshll.u32 %s1407_s24, 4  ;;  %s36_s25 = int_to_ptr.vmem [resolvable:$true] %s35_s25 }
   0x3   :  { %s1351_s26 = scalar_lea.vmem %s36_s25, 8192  ;;  %p1356_p1 = scmp.lt.s32.totalorder %s36_s25, %s36_s25 }
   0x4   :  { %p1352_p0 = scmp.ne.s32.totalorder %s36_s25, %s1351_s26  ;;  %p1357_p2 = scmp.lt.s32.totalorder %s1351_s26, %s1351_s26 }
   0x6   :  { %p1358_p3 = por %p1357_p2, %p1356_p1 }
   0x8   :  { %p1359_p4 = pnand %p1358_p3, %p1352_p0 }
   0xa   :  { %1362 = shalt.err (!%p1359_p4)
}
   0xb   :  { %s1408_s27 = smov 128   ;;  %s1409_s28 = smov 8  }
   0xc   :  { %41 = dma.hbm_to_vmem [thread:$0]  %s1494_s3, 8192, %s36_s25, [#allocation5], %s1408_s27, %s1408_s27, %s1409_s28  }
   0xd   :  { %s1410_s8 = smov [#allocation2]  }
   0xe   :  { %s21_s9 = sshll.u32 %s1410_s8, 4  ;;  %s22_s9 = int_to_ptr.vmem [resolvable:$true] %s21_s9 }
   0xf   :  { %s1371_s10 = scalar_lea.vmem %s22_s9, 4096  ;;  %p1376_p6 = scmp.lt.s32.totalorder %s22_s9, %s22_s9 }
  0x10   :  { %p1372_p5 = scmp.ne.s32.totalorder %s22_s9, %s1371_s10  ;;  %p1377_p7 = scmp.lt.s32.totalorder %s1371_s10, %s1371_s10 }
  0x12   :  { %p1378_p8 = por %p1377_p7, %p1376_p6 }
  0x14   :  { %p1379_p9 = pnand %p1378_p8, %p1372_p5 }
  0x16   :  { %1382 = shalt.err (!%p1379_p9)
}
  0x17   :  { %s1411_s11 = smov 256   ;;  %s1412_s12 = smov 16  }
  0x18   :  { %27 = dma.hbm_to_vmem [thread:$0]  %s1492_s1, 4096, %s22_s9, [#allocation3], %s1411_s11, %s1411_s11, %s1412_s12  }
  0x19   :  { %s1413_s15 = smov [#allocation6]  }
  0x1a   :  { %s49_s16 = sshll.u32 %s1413_s15, 4  ;;  %s50_s16 = int_to_ptr.vmem [resolvable:$true] %s49_s16 }
  0x1b   :  { %s1391_s3 = scalar_lea.vmem %s50_s16, 2048  ;;  %p1396_p11 = scmp.lt.s32.totalorder %s50_s16, %s50_s16 }
  0x1c   :  { %p1392_p10 = scmp.ne.s32.totalorder %s50_s16, %s1391_s3  ;;  %p1397_p12 = scmp.lt.s32.totalorder %s1391_s3, %s1391_s3 }
  0x1e   :  { %p1398_p13 = por %p1397_p12, %p1396_p11 }
  0x20   :  { %p1399_p0 = pnand %p1398_p13, %p1392_p10 }
  0x22   :  { %1402 = shalt.err (!%p1399_p0)
}
  0x23   :  { %s1414_s17 = smov 64   ;;  %s1415_s18 = smov 4  }
  0x24   :  { %55 = dma.hbm_to_vmem [thread:$0]  %s1496_s5, 2048, %s50_s16, [#allocation5], %s1414_s17, %s1414_s17, %s1415_s18  }
  0x25   :  { %1403 = dma.done.wait [#allocation3], 4096  }
  0x26   :  { %1404 = vsyncadd [#allocation3], 4294963200 }
  0x27   :  { %1405 = dma.done.wait [#allocation5], 10240  }
  0x28   :  { %1406 = vsyncadd [#allocation5], 4294957056  ;;  %v1416_v0 = vmov 0   ;;  %v1183_v1 = vld [vmem:[#allocation2 + $0xe4] ss:$16 sps:$4 sm:$0xff]  }
  0x29   :  { %315 = vmatprep.mubr.bf16.mxu0 %v1416_v0  ;;  %356 = vmatprep.mubr.bf16.mxu1 %v1416_v0  ;;  %v1185_v2 = vld [vmem:[#allocation2 + $0xec] ss:$16 sps:$4 sm:$0xff]   ;;  %v1187_v3 = vld [vmem:[#allocation2 + $0xe0] ss:$16 sps:$4 sm:$0xff]   ;;  %v1188_v4 = vld [vmem:[#allocation2 + $0xe8] ss:$16 sps:$4 sm:$0xff]  }
  0x2a   :  { %283 = vmatprep.subr.bf16.mxu0 %v1183_v1  ;;  %324 = vmatprep.subr.bf16.mxu1 %v1185_v2  ;;  %v1189_v5 = vld [vmem:[#allocation2 + $0xc4] ss:$16 sps:$4 sm:$0xff]   ;;  %v1191_v6 = vld [vmem:[#allocation2 + $0xcc] ss:$16 sps:$4 sm:$0xff]   ;;  %v1193_v7 = vld [vmem:[#allocation2 + $0xc0] ss:$16 sps:$4 sm:$0xff]  }
  0x2b   :  { %284 = vmatpush1.bf16.msra.mxu0 %v1187_v3  ;;  %325 = vmatpush1.bf16.msra.mxu1 %v1188_v4  ;;  %v1194_v8 = vld [vmem:[#allocation2 + $0xc8] ss:$16 sps:$4 sm:$0xff]   ;;  %v1195_v9 = vld [vmem:[#allocation2 + $0xa4] ss:$16 sps:$4 sm:$0xff]   ;;  %v1197_v10 = vld [vmem:[#allocation2 + $0xac] ss:$16 sps:$4 sm:$0xff]  }
  0x2c   :  { %285 = vmatprep.subr.bf16.mxu0 %v1189_v5  ;;  %326 = vmatprep.subr.bf16.mxu1 %v1191_v6  ;;  %v1199_v11 = vld [vmem:[#allocation2 + $0xa0] ss:$16 sps:$4 sm:$0xff]   ;;  %v1200_v12 = vld [vmem:[#allocation2 + $0xa8] ss:$16 sps:$4 sm:$0xff]   ;;  %v1201_v13 = vld [vmem:[#allocation2 + $0x84] ss:$16 sps:$4 sm:$0xff]  }
  0x2d   :  { %v1203_v14 = vld [vmem:[#allocation2 + $0x8c] ss:$16 sps:$4 sm:$0xff]   ;;  %v1205_v15 = vld [vmem:[#allocation2 + $0x80] ss:$16 sps:$4 sm:$0xff]   ;;  %v1206_v16 = vld [vmem:[#allocation2 + $0x88] ss:$16 sps:$4 sm:$0xff]  }
  0x2e   :  { %v1207_v17 = vld [vmem:[#allocation2 + $0x64] ss:$16 sps:$4 sm:$0xff]   ;;  %v1209_v18 = vld [vmem:[#allocation2 + $0x6c] ss:$16 sps:$4 sm:$0xff]   ;;  %v1211_v19 = vld [vmem:[#allocation2 + $0x60] ss:$16 sps:$4 sm:$0xff]  }
  0x2f   :  { %286 = vmatpush1.bf16.msra.mxu0 %v1193_v7  ;;  %327 = vmatpush1.bf16.msra.mxu1 %v1194_v8  ;;  %v1212_v20 = vld [vmem:[#allocation2 + $0x68] ss:$16 sps:$4 sm:$0xff]   ;;  %v1213_v21 = vld [vmem:[#allocation2 + $0x44] ss:$16 sps:$4 sm:$0xff]   ;;  %v1215_v22 = vld [vmem:[#allocation2 + $0x4c] ss:$16 sps:$4 sm:$0xff]  }
  0x30   :  { %287 = vmatprep.subr.bf16.mxu0 %v1195_v9  ;;  %328 = vmatprep.subr.bf16.mxu1 %v1197_v10  ;;  %v1217_v23 = vld [vmem:[#allocation2 + $0x40] ss:$16 sps:$4 sm:$0xff]   ;;  %v1218_v24 = vld [vmem:[#allocation2 + $0x48] ss:$16 sps:$4 sm:$0xff]   ;;  %v1219_v25 = vld [vmem:[#allocation2 + $0x24] ss:$16 sps:$4 sm:$0xff]  }
  0x31   :  { %v1221_v26 = vld [vmem:[#allocation2 + $0x2c] ss:$16 sps:$4 sm:$0xff]   ;;  %v1223_v27 = vld [vmem:[#allocation2 + $0x20] ss:$16 sps:$4 sm:$0xff]   ;;  %v1224_v28 = vld [vmem:[#allocation2 + $0x28] ss:$16 sps:$4 sm:$0xff]  }
  0x32   :  { %v1225_v29 = vld [vmem:[#allocation2 + $0x4] ss:$16 sps:$4 sm:$0xff]   ;;  %v1227_v30 = vld [vmem:[#allocation2 + $0xc] ss:$16 sps:$4 sm:$0xff]   ;;  %v1229_v31 = vld [vmem:[#allocation2] ss:$16 sps:$4 sm:$0xff]  }
  0x33   :  { %288 = vmatpush1.bf16.msra.mxu0 %v1199_v11  ;;  %329 = vmatpush1.bf16.msra.mxu1 %v1200_v12  ;;  %v1230_v32 = vld [vmem:[#allocation2 + $0x8] ss:$16 sps:$4 sm:$0xff]   ;;  %v1233_v33 = vld [vmem:[#allocation4 + $0x74] ss:$8 sps:$4 sm:$0xff]   ;;  %v68_v35 = vld [vmem:[%s1491_s0] sm:$0xf] }
  0x34   :  { %289 = vmatprep.subr.bf16.mxu0 %v1201_v13  ;;  %330 = vmatprep.subr.bf16.mxu1 %v1203_v14  ;;  %v1236_v34 = vld [vmem:[#allocation4 + $0x174] ss:$8 sps:$4 sm:$0xff]   ;;  %v1231_v36 = vld [vmem:[#allocation4 + $0x70] ss:$8 sps:$4 sm:$0xff]   ;;  %v1239_v38 = vld [vmem:[#allocation4 + $0x64] ss:$8 sps:$4 sm:$0xff]  }
  0x35   :  { %v1234_v37 = vld [vmem:[#allocation4 + $0x170] ss:$8 sps:$4 sm:$0xff]   ;;  %v1242_v39 = vld [vmem:[#allocation4 + $0x164] ss:$8 sps:$4 sm:$0xff]   ;;  %v1237_v40 = vld [vmem:[#allocation4 + $0x60] ss:$8 sps:$4 sm:$0xff]  }
  0x36   :  { %v1240_v41 = vld [vmem:[#allocation4 + $0x160] ss:$8 sps:$4 sm:$0xff]   ;;  %v1245_v42 = vld [vmem:[#allocation4 + $0x54] ss:$8 sps:$4 sm:$0xff]   ;;  %v1243_v44 = vld [vmem:[#allocation4 + $0x50] ss:$8 sps:$4 sm:$0xff]  }
  0x37   :  { %290 = vmatpush1.bf16.msra.mxu0 %v1205_v15  ;;  %331 = vmatpush1.bf16.msra.mxu1 %v1206_v16  ;;  %v1248_v43 = vld [vmem:[#allocation4 + $0x154] ss:$8 sps:$4 sm:$0xff]   ;;  %v1246_v45 = vld [vmem:[#allocation4 + $0x150] ss:$8 sps:$4 sm:$0xff]   ;;  %v1251_v46 = vld [vmem:[#allocation4 + $0x44] ss:$8 sps:$4 sm:$0xff]  }
  0x38   :  { %291 = vmatprep.subr.bf16.mxu0 %v1207_v17  ;;  %332 = vmatprep.subr.bf16.mxu1 %v1209_v18  ;;  %v1254_v47 = vld [vmem:[#allocation4 + $0x144] ss:$8 sps:$4 sm:$0xff]   ;;  %v1249_v48 = vld [vmem:[#allocation4 + $0x40] ss:$8 sps:$4 sm:$0xff]   ;;  %v1257_v50 = vld [vmem:[#allocation4 + $0x34] ss:$8 sps:$4 sm:$0xff]  }
  0x39   :  { %v1252_v49 = vld [vmem:[#allocation4 + $0x140] ss:$8 sps:$4 sm:$0xff]   ;;  %v1260_v51 = vld [vmem:[#allocation4 + $0x134] ss:$8 sps:$4 sm:$0xff]   ;;  %v1255_v52 = vld [vmem:[#allocation4 + $0x30] ss:$8 sps:$4 sm:$0xff]  }
  0x3a   :  { %v1258_v53 = vld [vmem:[#allocation4 + $0x130] ss:$8 sps:$4 sm:$0xff]   ;;  %v1263_v54 = vld [vmem:[#allocation4 + $0x24] ss:$8 sps:$4 sm:$0xff]   ;;  %v1261_v56 = vld [vmem:[#allocation4 + $0x20] ss:$8 sps:$4 sm:$0xff]  }
  0x3b   :  { %292 = vmatpush1.bf16.msra.mxu0 %v1211_v19  ;;  %333 = vmatpush1.bf16.msra.mxu1 %v1212_v20  ;;  %v1266_v55 = vld [vmem:[#allocation4 + $0x124] ss:$8 sps:$4 sm:$0xff]   ;;  %v1264_v57 = vld [vmem:[#allocation4 + $0x120] ss:$8 sps:$4 sm:$0xff]   ;;  %v1269_v58 = vld [vmem:[#allocation4 + $0x14] ss:$8 sps:$4 sm:$0xff]  }
  0x3c   :  { %293 = vmatprep.subr.bf16.mxu0 %v1213_v21  ;;  %334 = vmatprep.subr.bf16.mxu1 %v1215_v22  ;;  %v1272_v59 = vld [vmem:[#allocation4 + $0x114] ss:$8 sps:$4 sm:$0xff]   ;;  %v1267_v60 = vld [vmem:[#allocation4 + $0x10] ss:$8 sps:$4 sm:$0xff]   ;;  %v1275_v62 = vld [vmem:[#allocation4 + $0x4] ss:$8 sps:$4 sm:$0xff]  }
  0x3d   :  { %v1270_v61 = vld [vmem:[#allocation4 + $0x110] ss:$8 sps:$4 sm:$0xff]   ;;  %v1278_v63 = vld [vmem:[#allocation4 + $0x104] ss:$8 sps:$4 sm:$0xff]   ;;  %v1273_v0 = vld [vmem:[#allocation4] ss:$8 sps:$4 sm:$0xff]  }
  0x3e   :  { %v1276_v1 = vld [vmem:[#allocation4 + $0x100] ss:$8 sps:$4 sm:$0xff]   ;;  %v1281_v2 = vld [vmem:[#allocation4 + $0xf4] ss:$8 sps:$4 sm:$0xff]   ;;  %v1279_v4 = vld [vmem:[#allocation4 + $0xf0] ss:$8 sps:$4 sm:$0xff]  }
  0x3f   :  { %294 = vmatpush1.bf16.msra.mxu0 %v1217_v23  ;;  %335 = vmatpush1.bf16.msra.mxu1 %v1218_v24  ;;  %v1284_v3 = vld [vmem:[#allocation4 + $0x1f4] ss:$8 sps:$4 sm:$0xff]   ;;  %v1282_v5 = vld [vmem:[#allocation4 + $0x1f0] ss:$8 sps:$4 sm:$0xff]   ;;  %v1287_v6 = vld [vmem:[#allocation4 + $0xe4] ss:$8 sps:$4 sm:$0xff]  }
  0x40   :  { %295 = vmatprep.subr.bf16.mxu0 %v1219_v25  ;;  %336 = vmatprep.subr.bf16.mxu1 %v1221_v26  ;;  %v1290_v7 = vld [vmem:[#allocation4 + $0x1e4] ss:$8 sps:$4 sm:$0xff]   ;;  %v1285_v8 = vld [vmem:[#allocation4 + $0xe0] ss:$8 sps:$4 sm:$0xff]   ;;  %v1293_v10 = vld [vmem:[#allocation4 + $0xd4] ss:$8 sps:$4 sm:$0xff]  }
  0x41   :  { %v1288_v9 = vld [vmem:[#allocation4 + $0x1e0] ss:$8 sps:$4 sm:$0xff]   ;;  %v1296_v11 = vld [vmem:[#allocation4 + $0x1d4] ss:$8 sps:$4 sm:$0xff]   ;;  %v1291_v12 = vld [vmem:[#allocation4 + $0xd0] ss:$8 sps:$4 sm:$0xff]  }
  0x42   :  { %v1294_v13 = vld [vmem:[#allocation4 + $0x1d0] ss:$8 sps:$4 sm:$0xff]   ;;  %v1299_v14 = vld [vmem:[#allocation4 + $0xc4] ss:$8 sps:$4 sm:$0xff]   ;;  %v1297_v16 = vld [vmem:[#allocation4 + $0xc0] ss:$8 sps:$4 sm:$0xff]  }
  0x43   :  { %296 = vmatpush1.bf16.msra.mxu0 %v1223_v27  ;;  %337 = vmatpush1.bf16.msra.mxu1 %v1224_v28  ;;  %v1302_v15 = vld [vmem:[#allocation4 + $0x1c4] ss:$8 sps:$4 sm:$0xff]   ;;  %v1300_v17 = vld [vmem:[#allocation4 + $0x1c0] ss:$8 sps:$4 sm:$0xff]   ;;  %v1305_v18 = vld [vmem:[#allocation4 + $0xb4] ss:$8 sps:$4 sm:$0xff]  }
  0x44   :  { %297 = vmatprep.subr.bf16.mxu0 %v1225_v29  ;;  %338 = vmatprep.subr.bf16.mxu1 %v1227_v30  ;;  %v1308_v19 = vld [vmem:[#allocation4 + $0x1b4] ss:$8 sps:$4 sm:$0xff]   ;;  %v1303_v20 = vld [vmem:[#allocation4 + $0xb0] ss:$8 sps:$4 sm:$0xff]   ;;  %v1311_v22 = vld [vmem:[#allocation4 + $0xa4] ss:$8 sps:$4 sm:$0xff]  }
  0x45   :  { %v1306_v21 = vld [vmem:[#allocation4 + $0x1b0] ss:$8 sps:$4 sm:$0xff]   ;;  %v1314_v23 = vld [vmem:[#allocation4 + $0x1a4] ss:$8 sps:$4 sm:$0xff]   ;;  %v1309_v24 = vld [vmem:[#allocation4 + $0xa0] ss:$8 sps:$4 sm:$0xff]  }
  0x46   :  { %v1312_v25 = vld [vmem:[#allocation4 + $0x1a0] ss:$8 sps:$4 sm:$0xff]   ;;  %v1317_v26 = vld [vmem:[#allocation4 + $0x94] ss:$8 sps:$4 sm:$0xff]   ;;  %v1315_v28 = vld [vmem:[#allocation4 + $0x90] ss:$8 sps:$4 sm:$0xff]  }
  0x47   :  { %298 = vmatpush1.bf16.msra.mxu0 %v1229_v31  ;;  %339 = vmatpush1.bf16.msra.mxu1 %v1230_v32  ;;  %v1320_v27 = vld [vmem:[#allocation4 + $0x194] ss:$8 sps:$4 sm:$0xff]   ;;  %v1318_v29 = vld [vmem:[#allocation4 + $0x190] ss:$8 sps:$4 sm:$0xff]   ;;  %v1323_v30 = vld [vmem:[#allocation4 + $0x84] ss:$8 sps:$4 sm:$0xff]  }
  0x48   :  { %769 = vmatprep.subr.bf16.mxu0 %v1233_v33  ;;  %810 = vmatprep.subr.bf16.mxu1 %v1236_v34  ;;  %v1326_v31 = vld [vmem:[#allocation4 + $0x184] ss:$8 sps:$4 sm:$0xff]   ;;  %v1321_v32 = vld [vmem:[#allocation4 + $0x80] ss:$8 sps:$4 sm:$0xff]   ;;  %v1327_v34 = vld [vmem:[#allocation6 + $0x78] sm:$0xff]  }
  0x49   :  { %v1324_v33 = vld [vmem:[#allocation4 + $0x180] ss:$8 sps:$4 sm:$0xff]  }
  0x4a   :  { %316 = vmatmul.mubr.bf16.vlgmr.msra.gmra.mxu0 %v68_v35  ;;  %357 = vmatmul.mubr.bf16.vlgmr.msra.gmra.mxu1 %v68_v35  ;;  %v103_v35 = vlaneseq }
  0x4b   :  { %770 = vmatpush1.bf16.msra.mxu0 %v1231_v36  ;;  %811 = vmatpush1.bf16.msra.mxu1 %v1234_v37 }
  0x4c   :  { %771 = vmatprep.subr.bf16.mxu0 %v1239_v38  ;;  %812 = vmatprep.subr.bf16.mxu1 %v1242_v39  ;;  %v1469_v36 = vshrl.u32 %v103_v35, 7  ;;  %v101_v39 = vld [vmem:[%s1493_s2] sm:$0xf] }
  0x4e   :  { %v105_v37 = vsub.s32 0, %v1469_v36  ;;  %v113_v38 = vsub.s32 2, %v1469_v36 }
  0x4f   :  { %772 = vmatpush1.bf16.msra.mxu0 %v1237_v40  ;;  %813 = vmatpush1.bf16.msra.mxu1 %v1240_v41  ;;  %v109_v40 = vsub.s32 1, %v1469_v36  ;;  %v117_v41 = vsub.s32 3, %v1469_v36 }
  0x50   :  { %773 = vmatprep.subr.bf16.mxu0 %v1245_v42  ;;  %814 = vmatprep.subr.bf16.mxu1 %v1248_v43  ;;  %v106_v42 = vrot.slane %v101_v39, %v105_v37  ;;  %v114_v43 = vrot.slane %v101_v39, %v113_v38 }
  0x53   :  { %774 = vmatpush1.bf16.msra.mxu0 %v1243_v44  ;;  %815 = vmatpush1.bf16.msra.mxu1 %v1246_v45  ;;  %v110_v44 = vrot.slane %v101_v39, %v109_v40  ;;  %v118_v45 = vrot.slane %v101_v39, %v117_v41 }
  0x54   :  { %775 = vmatprep.subr.bf16.mxu0 %v1251_v46  ;;  %816 = vmatprep.subr.bf16.mxu1 %v1254_v47 }
  0x57   :  { %776 = vmatpush1.bf16.msra.mxu0 %v1249_v48  ;;  %817 = vmatpush1.bf16.msra.mxu1 %v1252_v49 }
  0x58   :  { %777 = vmatprep.subr.bf16.mxu0 %v1257_v50  ;;  %818 = vmatprep.subr.bf16.mxu1 %v1260_v51 }
  0x5b   :  { %778 = vmatpush1.bf16.msra.mxu0 %v1255_v52  ;;  %819 = vmatpush1.bf16.msra.mxu1 %v1258_v53 }
  0x5c   :  { %779 = vmatprep.subr.bf16.mxu0 %v1263_v54  ;;  %820 = vmatprep.subr.bf16.mxu1 %v1266_v55 }
  0x5f   :  { %780 = vmatpush1.bf16.msra.mxu0 %v1261_v56  ;;  %821 = vmatpush1.bf16.msra.mxu1 %v1264_v57 }
  0x60   :  { %781 = vmatprep.subr.bf16.mxu0 %v1269_v58  ;;  %822 = vmatprep.subr.bf16.mxu1 %v1272_v59 }
  0x63   :  { %782 = vmatpush1.bf16.msra.mxu0 %v1267_v60  ;;  %823 = vmatpush1.bf16.msra.mxu1 %v1270_v61 }
  0x64   :  { %783 = vmatprep.subr.bf16.mxu0 %v1275_v62  ;;  %824 = vmatprep.subr.bf16.mxu1 %v1278_v63 }
  0x67   :  { %784 = vmatpush1.bf16.msra.mxu0 %v1273_v0  ;;  %825 = vmatpush1.bf16.msra.mxu1 %v1276_v1  ;;  %v1328_v1 = vld [vmem:[#allocation6 + $0x38] sm:$0xff]  }
  0x68   :  { %785 = vmatprep.subr.bf16.mxu0 %v1281_v2  ;;  %826 = vmatprep.subr.bf16.mxu1 %v1284_v3  ;;  %v1329_v3 = vld [vmem:[#allocation6 + $0x70] sm:$0xff]  }
  0x6b   :  { %786 = vmatpush2.bf16.msra.mxu0 %v1279_v4  ;;  %827 = vmatpush2.bf16.msra.mxu1 %v1282_v5  ;;  %v1330_v4 = vld [vmem:[#allocation6 + $0x30] sm:$0xff]   ;;  %v1331_v5 = vld [vmem:[#allocation6 + $0x68] sm:$0xff]  }
  0x6c   :  { %787 = vmatprep.subr.bf16.mxu0 %v1287_v6  ;;  %828 = vmatprep.subr.bf16.mxu1 %v1290_v7  ;;  %v1332_v6 = vld [vmem:[#allocation6 + $0x28] sm:$0xff]   ;;  %v1333_v7 = vld [vmem:[#allocation6 + $0x60] sm:$0xff]  }
  0x6f   :  { %788 = vmatpush2.bf16.msra.mxu0 %v1285_v8  ;;  %829 = vmatpush2.bf16.msra.mxu1 %v1288_v9  ;;  %v1334_v8 = vld [vmem:[#allocation6 + $0x20] sm:$0xff]   ;;  %v1335_v9 = vld [vmem:[#allocation6 + $0x58] sm:$0xff]  }
  0x70   :  { %789 = vmatprep.subr.bf16.mxu0 %v1293_v10  ;;  %830 = vmatprep.subr.bf16.mxu1 %v1296_v11  ;;  %v1336_v10 = vld [vmem:[#allocation6 + $0x18] sm:$0xff]   ;;  %v1337_v11 = vld [vmem:[#allocation6 + $0x50] sm:$0xff]  }
  0x73   :  { %790 = vmatpush2.bf16.msra.mxu0 %v1291_v12  ;;  %831 = vmatpush2.bf16.msra.mxu1 %v1294_v13  ;;  %v1338_v12 = vld [vmem:[#allocation6 + $0x10] sm:$0xff]   ;;  %v1339_v13 = vld [vmem:[#allocation6 + $0x48] sm:$0xff]  }
  0x74   :  { %791 = vmatprep.subr.bf16.mxu0 %v1299_v14  ;;  %832 = vmatprep.subr.bf16.mxu1 %v1302_v15  ;;  %v1340_v14 = vld [vmem:[#allocation6 + $0x8] sm:$0xff]   ;;  %v1341_v15 = vld [vmem:[#allocation6 + $0x40] sm:$0xff]  }
  0x77   :  { %792 = vmatpush2.bf16.msra.mxu0 %v1297_v16  ;;  %833 = vmatpush2.bf16.msra.mxu1 %v1300_v17  ;;  %v1342_v16 = vld [vmem:[#allocation6] sm:$0xff]  }
  0x78   :  { %793 = vmatprep.subr.bf16.mxu0 %v1305_v18  ;;  %834 = vmatprep.subr.bf16.mxu1 %v1308_v19  ;;  %v437_v17 = vld [vmem:[%s1495_s4] sm:$0x3] }
  0x79   :  { %v442_v18 = vrot.slane %v437_v17, %v105_v37  ;;  %v446_v19 = vrot.slane %v437_v17, %v109_v40  ;;  %v1134_v37 = vld [vmem:[%s1497_s6] ss:$0 sm:$0xff] }
  0x7b   :  { %794 = vmatpush2.bf16.msra.mxu0 %v1303_v20  ;;  %835 = vmatpush2.bf16.msra.mxu1 %v1306_v21 }
  0x7c   :  { %795 = vmatprep.subr.bf16.mxu0 %v1311_v22  ;;  %836 = vmatprep.subr.bf16.mxu1 %v1314_v23 }
  0x7f   :  { %796 = vmatpush2.bf16.msra.mxu0 %v1309_v24  ;;  %837 = vmatpush2.bf16.msra.mxu1 %v1312_v25 }
  0x80   :  { %797 = vmatprep.subr.bf16.mxu0 %v1317_v26  ;;  %838 = vmatprep.subr.bf16.mxu1 %v1320_v27 }
  0x83   :  { %798 = vmatpush2.bf16.msra.mxu0 %v1315_v28  ;;  %839 = vmatpush2.bf16.msra.mxu1 %v1318_v29 }
  0x84   :  { %799 = vmatprep.subr.bf16.mxu0 %v1323_v30  ;;  %840 = vmatprep.subr.bf16.mxu1 %v1326_v31 }
  0x87   :  { %800 = vmatpush2.bf16.msra.mxu0 %v1321_v32  ;;  %841 = vmatpush2.bf16.msra.mxu1 %v1324_v33 }
  0x88   :  { %1151 = vmatprep.subr.bf16.mxu0 %v1327_v34 }
 0x10a   :  { %v317_v46 = vpop.f32.mrf.mxu0  ;;  %v358_v47 = vpop.f32.mrf.mxu1 }
 0x10b   :  { %v318_v48 = vadd.f32 %v317_v46, %v106_v42  ;;  %v359_v49 = vadd.f32 %v358_v47, %v114_v43 }
 0x10c   :  { %v319_v50 = vpop.f32.mrf.mxu0  ;;  %v360_v51 = vpop.f32.mrf.mxu1 }
 0x10d   :  { %v367_v52 = vmax.f32 %v359_v49, 0.0  ;;  %v320_v53 = vadd.f32 %v319_v50, %v110_v44  ;;  %v361_v54 = vadd.f32 %v360_v51, %v118_v45  ;;  %v365_v55 = vmax.f32 %v318_v48, 0.0 }
 0x10e   :  { %v321_v56 = vpop.f32.mrf.mxu0  ;;  %v362_v57 = vpop.f32.mrf.mxu1 }
 0x10f   :  { %v366_v58 = vmax.f32 %v320_v53, 0.0  ;;  %v368_v59 = vmax.f32 %v361_v54, 0.0  ;;  %v371_v60 = vpack.c.bf16 %v367_v52, %v367_v52  ;;  %v369_v2 = vpack.c.bf16 %v365_v55, %v365_v55 }
 0x110   :  { %v322_v61 = vpop.f32.mrf.mxu0  ;;  %v363_v62 = vpop.f32.mrf.mxu1 }
 0x111   :  { %v370_v63 = vpack.c.bf16 %v366_v58, %v366_v58  ;;  %v372_v0 = vpack.c.bf16 %v368_v59, %v368_v59 }
 0x113   :  { %801 = vmatprep.mubr.bf16.mxu0 %v370_v63  ;;  %842 = vmatprep.mubr.bf16.mxu1 %v372_v0 }
 0x114   :  { %802 = vmatmul.mubr.bf16.vlgmr.msra.gmra.mxu0 %v369_v2  ;;  %843 = vmatmul.mubr.bf16.vlgmr.msra.gmra.mxu1 %v371_v60 }
 0x115   :  { %1152 = vmatpush3.bf16.msra.mxu0 %v1328_v1 }
 0x116   :  { %1153 = vmatprep.subr.bf16.mxu0 %v1329_v3 }
 0x119   :  { %1154 = vmatpush3.bf16.msra.mxu0 %v1330_v4 }
 0x11a   :  { %1155 = vmatprep.subr.bf16.mxu0 %v1331_v5 }
 0x11d   :  { %1156 = vmatpush3.bf16.msra.mxu0 %v1332_v6 }
 0x11e   :  { %1157 = vmatprep.subr.bf16.mxu0 %v1333_v7 }
 0x121   :  { %1158 = vmatpush3.bf16.msra.mxu0 %v1334_v8 }
 0x122   :  { %1159 = vmatprep.subr.bf16.mxu0 %v1335_v9 }
 0x125   :  { %1160 = vmatpush3.bf16.msra.mxu0 %v1336_v10 }
 0x126   :  { %1161 = vmatprep.subr.bf16.mxu0 %v1337_v11 }
 0x129   :  { %1162 = vmatpush3.bf16.msra.mxu0 %v1338_v12 }
 0x12a   :  { %1163 = vmatprep.subr.bf16.mxu0 %v1339_v13 }
 0x12d   :  { %1164 = vmatpush3.bf16.msra.mxu0 %v1340_v14 }
 0x12e   :  { %1165 = vmatprep.subr.bf16.mxu0 %v1341_v15 }
 0x131   :  { %1166 = vmatpush3.bf16.msra.mxu0 %v1342_v16 }
 0x1d4   :  { %v803_v20 = vpop.f32.mrf.mxu0  ;;  %v844_v21 = vpop.f32.mrf.mxu1 }
 0x1d5   :  { %v804_v22 = vadd.f32 %v803_v20, %v442_v18 }
 0x1d6   :  { %v805_v23 = vpop.f32.mrf.mxu0  ;;  %v846_v24 = vpop.f32.mrf.mxu1 }
 0x1d7   :  { %v845_v25 = vadd.f32 %v844_v21, %v804_v22  ;;  %v806_v26 = vadd.f32 %v805_v23, %v446_v19 }
 0x1d8   :  { %v807_v27 = vpop.f32.mrf.mxu0  ;;  %v848_v28 = vpop.f32.mrf.mxu1 }
 0x1d9   :  { %v847_v29 = vadd.f32 %v846_v24, %v806_v26  ;;  %v851_v30 = vmax.f32 %v845_v25, 0.0 }
 0x1da   :  { %v808_v31 = vpop.f32.mrf.mxu0  ;;  %v849_v32 = vpop.f32.mrf.mxu1 }
 0x1db   :  { %v852_v33 = vmax.f32 %v847_v29, 0.0  ;;  %v853_v35 = vpack.c.bf16 %v851_v30, %v851_v30 }
 0x1dd   :  { %v854_v34 = vpack.c.bf16 %v852_v33, %v852_v33 }
 0x1df   :  { %1022 = vmatprep.mubr.bf16.mxu0 %v854_v34 }
 0x1e0   :  { %1023 = vmatmul.mubr.bf16.vlgmr.msra.gmra.mxu0 %v853_v35 }
 0x2a0   :  { %v1167_v36 = vpop.f32.mrf.mxu0 }
 0x2a2   :  { %v1168_v38 = vpop.f32.mrf.mxu0 }
 0x2a3   :  { %v1169_v39 = vadd.f32 %v1168_v38, %v1167_v36 }
 0x2a4   :  { %v1170_v40 = vpop.f32.mrf.mxu0 }
 0x2a5   :  { %v1025_v41 = vadd.f32 %v1169_v39, %v1134_v37 }
 0x2a6   :  { %v1171_v42 = vpop.f32.mrf.mxu0 }
 0x2a7   :  { %v1030_v43 = vpack.c.bf16 %v1025_v41, %v1025_v41 }
 0x2a9   :  { %1031 = vst [vmem:[%s1498_s7] sm:$0xf] %v1030_v43 }
 0x2aa   :  { %1036 = vsyncpa [#allocation3], 1 }
 0x2ab   :  { %1037 = vsyncpa [#allocation5], 1 }

</bundles_post_ra>
